<compile_context>
chip_gen: v7x
topology: tpu7x:2x2x1
jax: 0.10.0
libtpu: 0.0.40
codegen_flags: <defaults>
</compile_context>

<pallas_src>
import functools

import jax
import jax.numpy as jnp
from jax.experimental import pallas as pl
from jax.experimental.pallas import tpu as pltpu

LANE = 128
SUBLANE = 8


def _round_up(n, m):
    return ((n + m - 1) // m) * m


def _dqn_kernel(x_ref, w1_ref, b1_ref, w2_ref, b2_ref, o_ref, *, out_actions):
    # fc1: (Bt, in) @ (in, 128) + (1, 128) -> ReLU (f32 epilogue on the VPU).
    h = jnp.dot(x_ref[...], w1_ref[...], preferred_element_type=jnp.float32)
    h = jnp.maximum(h + b1_ref[...], 0.0)
    # out: (Bt, 128) @ (128, out_pad) on the MXU; padded columns (zeros of the
    # padded w2) are sliced off in-register so only useful bytes are stored.
    y = jnp.dot(h, w2_ref[...], preferred_element_type=jnp.float32)
    o_ref[...] = (y[:, :out_actions] + b2_ref[...]).astype(o_ref.dtype)


def _choose_batch_tiling(B, max_batch_tile, min_rows_per_core):
    """cdiv-based tile selection: minimal padding, large tiles, v7x-friendly."""
    B_aligned = _round_up(max(B, 1), SUBLANE)
    num_tiles = pl.cdiv(B_aligned, max_batch_tile)
    # v7x has two TensorCores behind the "parallel" grid axis: split a large
    # batch into an even number (>= 2) of steps, provided each core still gets
    # a worthwhile number of rows.  On v5e/v6e (1 TC) the only cost is one
    # extra ~0.35us grid-step of overhead, i.e. negligible.
    if B_aligned >= 2 * min_rows_per_core:
        if num_tiles == 1:
            num_tiles = 2
        elif num_tiles % 2:
            num_tiles += 1
    batch_tile = _round_up(pl.cdiv(B_aligned, num_tiles), SUBLANE)
    return batch_tile, num_tiles


def dqn_forward(x, w1, b1, w2, b2, *, max_batch_tile=4096, min_rows_per_core=256):
    B, in_states = x.shape
    hidden = w1.shape[1]
    out_actions = w2.shape[1]

    # Pad only w2's output columns (zeros) so the second dot keeps an
    # MXU-friendly 128-lane RHS; the output itself stays unpadded.
    out_pad = _round_up(out_actions, LANE)
    if out_pad != out_actions:
        w2 = jnp.pad(w2, ((0, 0), (0, out_pad - out_actions)))

    batch_tile, num_tiles = _choose_batch_tiling(B, max_batch_tile, min_rows_per_core)
    B_pad = batch_tile * num_tiles
    if B_pad != B:
        x = jnp.pad(x, ((0, B_pad - B), (0, 0)))

    flops = 2 * B_pad * (in_states * hidden + hidden * out_pad)
    bytes_accessed = 4 * (B_pad * in_states                 # x stream
                          + in_states * hidden + hidden     # w1, b1 (resident)
                          + hidden * out_pad + out_actions  # w2, b2 (resident)
                          + B_pad * out_actions)            # unpadded output

    kernel = functools.partial(_dqn_kernel, out_actions=out_actions)

    out = pl.pallas_call(
        kernel,
        out_shape=jax.ShapeDtypeStruct((B_pad, out_actions), jnp.float32),
        grid=(num_tiles,),
        in_specs=[
            # x streams per batch tile.
            pl.BlockSpec((batch_tile, in_states), lambda i: (i, 0)),
            # Weights/biases: same block every step -> VMEM-resident, one DMA.
            pl.BlockSpec((in_states, hidden), lambda i: (0, 0)),
            pl.BlockSpec((1, hidden), lambda i: (0, 0)),
            pl.BlockSpec((hidden, out_pad), lambda i: (0, 0)),
            pl.BlockSpec((1, out_actions), lambda i: (0, 0)),
        ],
        out_specs=pl.BlockSpec((batch_tile, out_actions), lambda i: (i, 0)),
        compiler_params=pltpu.CompilerParams(
            dimension_semantics=("parallel",)),
        cost_estimate=pl.CostEstimate(
            flops=flops, transcendentals=0, bytes_accessed=bytes_accessed),
    )(x, w1, b1, w2, b2)

    return out[:B, :]


def init_params(key, in_states, out_actions, hidden=128):
    # Deterministic init mimicking nn.Linear's U(-1/sqrt(fan_in), 1/sqrt(fan_in)).
    k1, k2, k3, k4 = jax.random.split(key, 4)
    bound1 = 1.0 / jnp.sqrt(jnp.float32(in_states))
    bound2 = 1.0 / jnp.sqrt(jnp.float32(hidden))
    w1 = jax.random.uniform(k1, (in_states, hidden), jnp.float32, -bound1, bound1)
    b1 = jax.random.uniform(k2, (1, hidden), jnp.float32, -bound1, bound1)
    w2 = jax.random.uniform(k3, (hidden, out_actions), jnp.float32, -bound2, bound2)
    b2 = jax.random.uniform(k4, (1, out_actions), jnp.float32, -bound2, bound2)
    return w1, b1, w2, b2


if __name__ == "__main__":
    in_states = 16
    out_actions = 4
    batch = 2

    key = jax.random.PRNGKey(0)
    kx, kp = jax.random.split(key)
    x = jax.random.normal(kx, (batch, in_states), jnp.float32)
    w1, b1, w2, b2 = init_params(kp, in_states, out_actions)

    y = dqn_forward(x, w1, b1, w2, b2)
    jax.block_until_ready(y)

    # Reference check (plain JAX, float32).
    h_ref = jnp.maximum(x @ w1 + b1, 0.0)
    y_ref = h_ref @ w2 + b2
    assert y.shape == (batch, out_actions)
    assert jnp.allclose(y, y_ref, atol=1e-5, rtol=1e-5)

    print("KERNEL_OK")
</pallas_src>

<mosaic_0001>
module attributes {stable_mosaic.version = 11 : i64} {
  func.func @_dqn_kernel(%arg0: i32, %arg1: memref<8x16xf32, #tpu.memory_space<vmem>>, %arg2: memref<16x128xf32, #tpu.memory_space<vmem>>, %arg3: memref<1x128xf32, #tpu.memory_space<vmem>>, %arg4: memref<128x128xf32, #tpu.memory_space<vmem>>, %arg5: memref<1x4xf32, #tpu.memory_space<vmem>>, %arg6: memref<8x4xf32, #tpu.memory_space<vmem>>) attributes {dimension_semantics = [#tpu.dimension_semantics<parallel>], iteration_bounds = array<i64: 1>, scalar_prefetch = 0 : i64, scratch_operands = 0 : i64, tpu.core_type = #tpu.core_type<tc>, window_params = [{transform_indices = @transform_0, window_bounds = array<i64: 8, 16>}, {pipeline_mode = #tpu.pipeline_mode<synchronous>, transform_indices = @transform_1, window_bounds = array<i64: 16, 128>}, {pipeline_mode = #tpu.pipeline_mode<synchronous>, transform_indices = @transform_2, window_bounds = array<i64: 1, 128>}, {pipeline_mode = #tpu.pipeline_mode<synchronous>, transform_indices = @transform_3, window_bounds = array<i64: 128, 128>}, {pipeline_mode = #tpu.pipeline_mode<synchronous>, transform_indices = @transform_4, window_bounds = array<i64: 1, 4>}, {transform_indices = @transform_5, window_bounds = array<i64: 8, 4>}]} {
    %c0 = arith.constant 0 : index
    %c0_0 = arith.constant 0 : index
    %0 = vector.load %arg1[%c0, %c0_0] : memref<8x16xf32, #tpu.memory_space<vmem>>, vector<8x16xf32>
    %c0_1 = arith.constant 0 : index
    %c0_2 = arith.constant 0 : index
    %1 = vector.load %arg2[%c0_1, %c0_2] : memref<16x128xf32, #tpu.memory_space<vmem>>, vector<16x128xf32>
    %cst = arith.constant dense<0.000000e+00> : vector<8x128xf32>
    %2 = tpu.matmul %0, %1, %cst {dimension_numbers = #tpu.dot_dimension_numbers<[1], [0], [0], [1], [0, 0, 1, 1], [], []>} : vector<8x16xf32>, vector<16x128xf32>, vector<8x128xf32> -> vector<8x128xf32>
    %c0_3 = arith.constant 0 : index
    %c0_4 = arith.constant 0 : index
    %3 = vector.load %arg3[%c0_3, %c0_4] : memref<1x128xf32, #tpu.memory_space<vmem>>, vector<1x128xf32>
    %4 = vector.broadcast %3 : vector<1x128xf32> to vector<8x128xf32>
    %5 = arith.addf %2, %4 : vector<8x128xf32>
    %cst_5 = arith.constant 0.000000e+00 : f32
    %6 = vector.broadcast %cst_5 : f32 to vector<8x128xf32>
    %7 = arith.maximumf %5, %6 : vector<8x128xf32>
    %c0_6 = arith.constant 0 : index
    %c0_7 = arith.constant 0 : index
    %8 = vector.load %arg4[%c0_6, %c0_7] : memref<128x128xf32, #tpu.memory_space<vmem>>, vector<128x128xf32>
    %cst_8 = arith.constant dense<0.000000e+00> : vector<8x128xf32>
    %9 = tpu.matmul %7, %8, %cst_8 {dimension_numbers = #tpu.dot_dimension_numbers<[1], [0], [0], [1], [0, 0, 1, 1], [], []>} : vector<8x128xf32>, vector<128x128xf32>, vector<8x128xf32> -> vector<8x128xf32>
    %10 = vector.extract_strided_slice %9 {offsets = [0, 0], sizes = [8, 4], strides = [1, 1]} : vector<8x128xf32> to vector<8x4xf32>
    %c0_9 = arith.constant 0 : index
    %c0_10 = arith.constant 0 : index
    %11 = vector.load %arg5[%c0_9, %c0_10] : memref<1x4xf32, #tpu.memory_space<vmem>>, vector<1x4xf32>
    %12 = vector.broadcast %11 : vector<1x4xf32> to vector<8x4xf32>
    %13 = arith.addf %10, %12 : vector<8x4xf32>
    %c0_11 = arith.constant 0 : index
    %c0_12 = arith.constant 0 : index
    %14 = vector.load %arg6[%c0_11, %c0_12] : memref<8x4xf32, #tpu.memory_space<vmem>>, vector<8x4xf32>
    tpu.vector_store %arg6[%c0_11, %c0_12], %13 {strides = array<i32>} : memref<8x4xf32, #tpu.memory_space<vmem>>, vector<8x4xf32>,
    return
  }
  func.func @transform_0(%arg0: i32) -> (i32, i32) {
    %c0_i32 = arith.constant 0 : i32
    %c0_i32_0 = arith.constant 0 : i32
    return %arg0, %c0_i32 : i32, i32
  }
  func.func @transform_1(%arg0: i32) -> (i32, i32) {
    %c0_i32 = arith.constant 0 : i32
    %c0_i32_0 = arith.constant 0 : i32
    %c0_i32_1 = arith.constant 0 : i32
    return %c0_i32, %c0_i32_0 : i32, i32
  }
  func.func @transform_2(%arg0: i32) -> (i32, i32) {
    %c0_i32 = arith.constant 0 : i32
    %c0_i32_0 = arith.constant 0 : i32
    %c0_i32_1 = arith.constant 0 : i32
    return %c0_i32, %c0_i32_0 : i32, i32
  }
  func.func @transform_3(%arg0: i32) -> (i32, i32) {
    %c0_i32 = arith.constant 0 : i32
    %c0_i32_0 = arith.constant 0 : i32
    %c0_i32_1 = arith.constant 0 : i32
    return %c0_i32, %c0_i32_0 : i32, i32
  }
  func.func @transform_4(%arg0: i32) -> (i32, i32) {
    %c0_i32 = arith.constant 0 : i32
    %c0_i32_0 = arith.constant 0 : i32
    %c0_i32_1 = arith.constant 0 : i32
    return %c0_i32, %c0_i32_0 : i32, i32
  }
  func.func @transform_5(%arg0: i32) -> (i32, i32) {
    %c0_i32 = arith.constant 0 : i32
    %c0_i32_0 = arith.constant 0 : i32
    return %arg0, %c0_i32 : i32, i32
  }
}

</mosaic_0001>

<bundles_post_ra>
// kernel: tpu_custom_call.1
= control target key start
LH: loop header
LB: loop body
LE: loop exit
PB: predicated region body
PF: predicated region fallthrough
CT: control target
= control target key end

     0   :  { %10 = vsyncpa [#allocation3], 0  ;;  %s505_s0 = inlined_call_operand.hbm [shape: f32[8,16], index: 0, kind: input, shape index: {}]   ;;  %s506_s1 = inlined_call_operand.hbm [shape: f32[16,128], index: 1, kind: input, shape index: {}]   ;;  %s507_s2 = inlined_call_operand.vmem [shape: f32[1,128], index: 2, kind: input, shape index: {}]   ;;  %s508_s3 = inlined_call_operand.hbm [shape: f32[128,128], index: 3, kind: input, shape index: {}]   ;;  %s509_s4 = inlined_call_operand.vmem [shape: f32[1,4], index: 4, kind: input, shape index: {}]   ;;  %s510_s5 = inlined_call_operand.vmem [shape: f32[8,4], index: 5, kind: output, shape index: {}]  }
   0x1   :  { %11 = vsyncpa [#allocation5], 0  ;;  %s416_s18 = smov [#allocation4]   ;;  %s346_s22 = scalar_lea.hbm %s506_s1, 256 }
   0x2   :  { %s27_s19 = sshll.u32 %s416_s18, 4  ;;  %p347_p0 = scmp.ne.s32.totalorder %s506_s1, %s346_s22  ;;  %s28_s19 = int_to_ptr.vmem [resolvable:$true] %s27_s19 }
   0x3   :  { %p350_p1 = scmp.lt.u32.totalorder %s346_s22, %s506_s1 }
   0x5   :  { %p352_p2 = pnand %p350_p1, %p347_p0 }
   0x7   :  { %355 = shalt.err (!%p352_p2)
}
   0x8   :  { %s356_s27 = scalar_lea.vmem %s28_s19, 256  ;;  %p361_p4 = scmp.lt.s32.totalorder %s28_s19, %s28_s19 }
   0x9   :  { %p357_p3 = scmp.ne.s32.totalorder %s28_s19, %s356_s27  ;;  %p362_p5 = scmp.lt.s32.totalorder %s356_s27, %s356_s27 }
   0xb   :  { %p363_p6 = por %p362_p5, %p361_p4 }
   0xd   :  { %p364_p7 = pnand %p363_p6, %p357_p3 }
   0xf   :  { %367 = shalt.err (!%p364_p7)
}
  0x10   :  { %s417_s28 = smov 128   ;;  %s418_s29 = smov 8  }
  0x11   :  { %33 = dma.hbm_to_vmem [thread:$0]  %s506_s1, 256, %s28_s19, [#allocation5], %s417_s28, %s417_s28, %s418_s29  }
  0x12   :  { %s419_s7 = smov [#allocation2]   ;;  %s420_s9 = smov [#allocation6]  }
  0x13   :  { %s18_s8 = sshll.u32 %s419_s7, 4  ;;  %s41_s10 = sshll.u32 %s420_s9, 4  ;;  %s19_s8 = int_to_ptr.vmem [resolvable:$true] %s18_s8  ;;  %s42_s10 = int_to_ptr.vmem [resolvable:$true] %s41_s10 }
  0x14   :  { %s368_s13 = scalar_lea.hbm %s505_s0, 128 }
  0x15   :  { %p369_p8 = scmp.ne.s32.totalorder %s505_s0, %s368_s13  ;;  %p372_p9 = scmp.lt.u32.totalorder %s368_s13, %s505_s0 }
  0x17   :  { %p374_p10 = pnand %p372_p9, %p369_p8 }
  0x19   :  { %377 = shalt.err (!%p374_p10)
}
  0x1a   :  { %s378_s1 = scalar_lea.vmem %s19_s8, 128  ;;  %p383_p12 = scmp.lt.s32.totalorder %s19_s8, %s19_s8 }
  0x1b   :  { %p379_p11 = scmp.ne.s32.totalorder %s19_s8, %s378_s1  ;;  %p384_p13 = scmp.lt.s32.totalorder %s378_s1, %s378_s1 }
  0x1d   :  { %p385_p0 = por %p384_p13, %p383_p12 }
  0x1f   :  { %p386_p1 = pnand %p385_p0, %p379_p11 }
  0x21   :  { %389 = shalt.err (!%p386_p1)
}
  0x22   :  { %21 = dma.hbm_to_vmem [thread:$0]  %s505_s0, 128, %s19_s8, [#allocation3]  }
  0x23   :  { %s390_s22 = scalar_lea.hbm %s508_s3, 2048 }
  0x24   :  { %p391_p2 = scmp.ne.s32.totalorder %s508_s3, %s390_s22  ;;  %p394_p3 = scmp.lt.u32.totalorder %s390_s22, %s508_s3 }
  0x26   :  { %p396_p4 = pnand %p394_p3, %p391_p2 }
  0x28   :  { %399 = shalt.err (!%p396_p4)
}
  0x29   :  { %s400_s27 = scalar_lea.vmem %s42_s10, 2048  ;;  %p405_p6 = scmp.lt.s32.totalorder %s42_s10, %s42_s10 }
  0x2a   :  { %p401_p5 = scmp.ne.s32.totalorder %s42_s10, %s400_s27  ;;  %p406_p7 = scmp.lt.s32.totalorder %s400_s27, %s400_s27 }
  0x2c   :  { %p407_p8 = por %p406_p7, %p405_p6 }
  0x2e   :  { %p408_p9 = pnand %p407_p8, %p401_p5 }
  0x30   :  { %411 = shalt.err (!%p408_p9)
}
  0x31   :  { %47 = dma.hbm_to_vmem [thread:$0]  %s508_s3, 2048, %s42_s10, [#allocation5], %s417_s28, %s417_s28, %s418_s29  }
  0x32   :  { %412 = dma.done.wait [#allocation3], 128  }
  0x33   :  { %413 = vsyncadd [#allocation3], 4294967168 }
  0x34   :  { %414 = dma.done.wait [#allocation5], 2304  }
  0x35   :  { %415 = vsyncadd [#allocation5], 4294964992  ;;  %v421_v0 = vmov 0.0|0.0   ;;  %vm422_vm0 = vmmov 0   ;;  %v423_v1 = vmov 0.0   ;;  %v60_v2 = vld [vmem:[#allocation4] sm:$0xff] }
  0x36   :  { %311 = vmatprep.subr.bf16.mxu0 %v421_v0  ;;  %273 = vmatprep.mubr.msk.f32.mxu0 %vm422_vm0, %v423_v1  ;;  %v61_v3 = vld [vmem:[#allocation4 + $0x8] sm:$0xff]  ;;  %v144_v5 = vld [vmem:[#allocation6] sm:$0xff]  ;;  %v145_v6 = vld [vmem:[#allocation6 + $0x8] sm:$0xff]  ;;  %vm69_vm1 = vcmask 130048   ;;  %vm238_vm2 = vcmask 31744  }
  0x37   :  { %314 = vmatprep.subr.bf16.mxu1 %v421_v0  ;;  %308 = vmatprep.mubr.msk.f32.mxu1 %vm422_vm0, %v423_v1  ;;  %v312_v4 = vpack.c.bf16 %v61_v3, %v60_v2  ;;  %v146_v7 = vld [vmem:[#allocation6 + $0x10] sm:$0xff]  ;;  %v315_v8 = vpack.c.bf16 %v145_v6, %v144_v5  ;;  %v147_v9 = vld [vmem:[#allocation6 + $0x18] sm:$0xff]  ;;  %v59_v10 = vld [vmem:[#allocation2] sm:$0xff] }
  0x38   :  { %v318_v11 = vpack.c.bf16 %v147_v9, %v146_v7  ;;  %v148_v12 = vld [vmem:[#allocation6 + $0x20] sm:$0xff]  ;;  %v149_v13 = vld [vmem:[#allocation6 + $0x28] sm:$0xff]  ;;  %v150_v15 = vld [vmem:[#allocation6 + $0x30] sm:$0xff] }
  0x39   :  { %313 = vmatpush3.bf16.msra.mxu0 %v312_v4  ;;  %316 = vmatpush3.bf16.msra.mxu1 %v315_v8  ;;  %v321_v14 = vpack.c.bf16 %v149_v13, %v148_v12  ;;  %v151_v16 = vld [vmem:[#allocation6 + $0x38] sm:$0xff]  ;;  %v152_v18 = vld [vmem:[#allocation6 + $0x40] sm:$0xff]  ;;  %v153_v19 = vld [vmem:[#allocation6 + $0x48] sm:$0xff] }
  0x3a   :  { %317 = vmatprep.subr.bf16.mxu1 %v421_v0  ;;  %v324_v17 = vpack.c.bf16 %v151_v16, %v150_v15  ;;  %v327_v20 = vpack.c.bf16 %v153_v19, %v152_v18  ;;  %v154_v21 = vld [vmem:[#allocation6 + $0x50] sm:$0xff]  ;;  %v155_v22 = vld [vmem:[#allocation6 + $0x58] sm:$0xff]  ;;  %v156_v24 = vld [vmem:[#allocation6 + $0x60] sm:$0xff] }
  0x3b   :  { %v330_v23 = vpack.c.bf16 %v155_v22, %v154_v21  ;;  %v157_v25 = vld [vmem:[#allocation6 + $0x68] sm:$0xff]  ;;  %v158_v27 = vld [vmem:[#allocation6 + $0x70] sm:$0xff]  ;;  %v159_v28 = vld [vmem:[#allocation6 + $0x78] sm:$0xff] }
  0x3c   :  { %274 = vmatmul.mubr.msk.f32.vlgmr.msra.gmra.mrb[0].mxu0 %vm69_vm1, %v59_v10  ;;  %v333_v26 = vpack.c.bf16 %v157_v25, %v156_v24  ;;  %v336_v29 = vpack.c.bf16 %v159_v28, %v158_v27  ;;  %v246_v30 = vld [vmem:[%s507_s2] ss:$0 sm:$0xff] }
  0x3d   :  { %319 = vmatpush3.bf16.msra.mxu1 %v318_v11  ;;  %v248_v35 = vld [vmem:[%s509_s4] ss:$0 sm:$0xff] }
  0x3e   :  { %320 = vmatprep.subr.bf16.mxu1 %v421_v0 }
  0x41   :  { %322 = vmatpush3.bf16.msra.mxu1 %v321_v14 }
  0x42   :  { %323 = vmatprep.subr.bf16.mxu1 %v421_v0 }
  0x45   :  { %325 = vmatpush3.bf16.msra.mxu1 %v324_v17 }
  0x46   :  { %326 = vmatprep.subr.bf16.mxu1 %v421_v0 }
  0x49   :  { %328 = vmatpush3.bf16.msra.mxu1 %v327_v20 }
  0x4a   :  { %329 = vmatprep.subr.bf16.mxu1 %v421_v0 }
  0x4d   :  { %331 = vmatpush3.bf16.msra.mxu1 %v330_v23 }
  0x4e   :  { %332 = vmatprep.subr.bf16.mxu1 %v421_v0 }
  0x51   :  { %334 = vmatpush3.bf16.msra.mxu1 %v333_v26 }
  0x52   :  { %335 = vmatprep.subr.bf16.mxu1 %v421_v0 }
  0x55   :  { %337 = vmatpush3.bf16.msra.mxu1 %v336_v29 }
 0x10f   :  { %v139_v31 = vpop.f32.mrb[0].mxu0 }
 0x110   :  { %v140_v32 = vadd.f32 %v246_v30, %v139_v31  ;;  %v275_v33 = vpop.f32.mrb[1].mxu0 }
 0x112   :  { %v143_v34 = vmax.f32 %v140_v32, 0.0 }
 0x114   :  { %309 = vmatmul.mubr.f32.vlgmr.msra.gmra.mrb[0].mxu1 %v143_v34 }
 0x1e7   :  { %v226_v36 = vpop.f32.mrb[0].mxu1 }
 0x1e8   :  { %v237_v37 = vadd.f32 %v248_v35, %v226_v36  ;;  %v310_v38 = vpop.f32.mrb[1].mxu1 }
 0x1ea   :  { %239 = vst.msk [vmem:[%s510_s5] sm:$0xff] %vm238_vm2, %v237_v37 }
 0x1eb   :  { %244 = vsyncpa [#allocation3], 1 }
 0x1ec   :  { %245 = vsyncpa [#allocation5], 1 }

</bundles_post_ra>
